<compile_context>
chip_gen: v5e
topology: v5e:2x2
jax: 0.10.0
libtpu: 0.0.40
codegen_flags: <defaults>
</compile_context>

<pallas_src>
import functools

import jax
import jax.numpy as jnp
import numpy as np
from jax.experimental import pallas as pl
from jax.experimental.pallas import tpu as pltpu


def _round_up(x, m):
    return ((x + m - 1) // m) * m


# ----------------------------------------------------------------------------
# Pallas kernel: GraphAttention2 time branch, one depth layer (attn_heads = 1)
# ----------------------------------------------------------------------------
def gat2_time_kernel(feat_ref, ts_ref, g_ref, m_ref, attk_ref, out_ref, acc_ref,
                     *, d_real):
    # feat_ref : (Np, Dp) f32   tanh(time_features), zero-padded
    # ts_ref   : (tT, Dp) f32   raw times_sum tile (sparse @ time_emb, wrapper-computed)
    # g_ref    : (tT, Np) bf16  one-hot gather tile   (row e has 1 at adj_index[e, 1])
    # m_ref    : (tN, tT) bf16  one-hot scatter tile, PRE-TRANSPOSED (row n, col e)
    # attk_ref : (1, Dp)  f32   attention kernel (time head), zero-padded
    # out_ref  : (tN, Dp) f32   tanh(2 * softmax-weighted scatter-add)
    # acc_ref  : (tN, Dp) f32   accumulator; lane `d_real` carries the softmax denominator
    t = pl.program_id(1)

    @pl.when(t == 0)
    def _():
        acc_ref[...] = jnp.zeros_like(acc_ref)

    feats = feat_ref[...]                                               # (Np, Dp)

    # neighs = tanh(time_features)[adj_index[:, 1]]  (gather as a bf16 one-hot matmul)
    g = g_ref[...].astype(jnp.float32)
    neighs = jnp.dot(g, feats, preferred_element_type=jnp.float32)      # (tT, Dp)

    # times_sum = F.normalize(times_sum, p=2, dim=1)  (eps = 1e-12, via rsqrt)
    ts = ts_ref[...]
    ssq = jnp.sum(ts * ts, axis=-1, keepdims=True)
    ts_n = ts * jax.lax.rsqrt(jnp.maximum(ssq, 1e-24))                  # (tT, Dp)

    # Householder reflection of the neighbours
    dotp = jnp.sum(neighs * ts_n, axis=-1, keepdims=True)
    neighs_r = neighs - 2.0 * dotp * ts_n                               # (tT, Dp)

    # per-edge attention logit: GraphAttention2's time branch scores the REFLECTED
    # neighbours with attention_kernel[1]
    att1 = jnp.sum(neighs_r * attk_ref[...], axis=-1, keepdims=True)    # (tT, 1)

    # per-edge exp: tT transcendentals instead of tT*N.  tanh-bounded features keep
    # |att1| small so the un-shifted softmax is numerically safe (same result as the
    # max-shifted segment softmax up to fp rounding).
    ex = jnp.exp(att1)                                                  # (tT, 1)

    # Stash exp into the guaranteed-zero pad lane `d_real` so ONE MXU matmul
    # accumulates both the weighted neighbour sum and the softmax denominator.
    den_mark = (jax.lax.broadcasted_iota(jnp.int32, (1, attk_ref.shape[1]), 1)
                == d_real).astype(jnp.float32)                          # (1, Dp)
    wn = (neighs_r + den_mark) * ex                                     # (tT, Dp)

    m = m_ref[...].astype(jnp.float32)                                  # (tN, tT)
    acc_ref[...] += jnp.dot(m, wn, preferred_element_type=jnp.float32)  # (tN, Dp)

    @pl.when(t == pl.num_programs(1) - 1)
    def _():
        acc = acc_ref[...]
        den = acc[:, d_real:d_real + 1]                                 # (tN, 1) segment sums
        inv = pl.reciprocal(jnp.where(den == 0.0, 1.0, den), approx=False)
        # features = activation(new_features * 2); pad lanes are sliced off in the wrapper
        out_ref[...] = jnp.tanh(2.0 * acc * inv)


def gat2_time_layer(feat_p, ts_p, gather_p, scatter_p, attk_p, *, d_real,
                    tile_n, tile_t):
    Np, Dp = feat_p.shape
    Tp = ts_p.shape[0]
    grid = (Np // tile_n, Tp // tile_t)
    kernel = functools.partial(gat2_time_kernel, d_real=d_real)
    return pl.pallas_call(
        kernel,
        out_shape=jax.ShapeDtypeStruct((Np, Dp), jnp.float32),
        grid_spec=pltpu.PrefetchScalarGridSpec(
            num_scalar_prefetch=0,
            grid=grid,
            in_specs=[
                pl.BlockSpec((Np, Dp), lambda n, t: (0, 0)),          # node features (resident)
                pl.BlockSpec((tile_t, Dp), lambda n, t: (t, 0)),      # times_sum tile
                pl.BlockSpec((tile_t, Np), lambda n, t: (t, 0)),      # gather one-hot tile
                pl.BlockSpec((tile_n, tile_t), lambda n, t: (n, t)),  # scatter one-hot tile
                pl.BlockSpec((1, Dp), lambda n, t: (0, 0)),           # attention kernel row
            ],
            out_specs=pl.BlockSpec((tile_n, Dp), lambda n, t: (n, 0)),
            scratch_shapes=[pltpu.VMEM((tile_n, Dp), jnp.float32)],
        ),
        compiler_params=pltpu.CompilerParams(
            dimension_semantics=("parallel", "arbitrary"),
            vmem_limit_bytes=32 * 1024 * 1024),
    )(feat_p, ts_p, gather_p, scatter_p, attk_p)


# ----------------------------------------------------------------------------
# Glue: GraphAttention2.forward (depth = 1, attn_heads = 1) -> outputs_time
# ----------------------------------------------------------------------------
def graph_attention2_forward(time_features, time_emb, adj_index, t_sparse_indices,
                             t_sparse_val, attn_kernel_time, node_size, time_sizeT,
                             triple_size):
    N, D = time_features.shape
    assert N == node_size

    # activation(time_features): first output half, also the gather source.
    feat_act = jnp.tanh(time_features)

    # times_sum = sparse((T, time_sizeT)) @ time_emb, folded into the wrapper as an
    # exact segment scatter-add (no dense (T, time_sizeT) operand, O(nnz * D)).
    times_sum = jnp.zeros((triple_size, D), jnp.float32).at[t_sparse_indices[:, 0]].add(
        t_sparse_val[:, None] * time_emb[t_sparse_indices[:, 1]])

    # --- padding / tiling: lane-dense, (8, 128)-aligned blocks ---
    Dp = _round_up(D + 1, 128)        # +1 guarantees a spare pad lane for the softmax denom
    tile_t = 512 if triple_size >= 512 else 128
    Tp = _round_up(triple_size, tile_t)
    tile_n = 256 if node_size > 256 else _round_up(node_size, 8)
    Np = _round_up(node_size, tile_n)

    e = jnp.arange(triple_size)
    src = adj_index[:, 1]
    dst = adj_index[:, 0]
    # bf16 one-hot operands: exact for 0/1, half the HBM/VMEM bytes.  Padded edges
    # have all-zero scatter columns so they contribute nothing to acc or denom.
    gather_p = jnp.zeros((Tp, Np), jnp.bfloat16).at[e, src].set(1.0)
    scatter_p = jnp.zeros((Np, Tp), jnp.bfloat16).at[dst, e].set(1.0)   # pre-transposed (N, T)

    feat_p = jnp.zeros((Np, Dp), jnp.float32).at[:N, :D].set(feat_act)
    ts_p = jnp.zeros((Tp, Dp), jnp.float32).at[:triple_size, :D].set(times_sum)
    attk_p = jnp.zeros((1, Dp), jnp.float32).at[:, :D].set(attn_kernel_time.T)

    agg = gat2_time_layer(feat_p, ts_p, gather_p, scatter_p, attk_p,
                          d_real=D, tile_n=tile_n, tile_t=tile_t)[:node_size, :D]

    # outputs_time = cat([activation(time_features), activation(2 * agg)], dim=1)
    return jnp.concatenate([feat_act, agg], axis=1)


# ----------------------------------------------------------------------------
# Pure-JAX reference (mirrors the torch GraphAttention2 time branch)
# ----------------------------------------------------------------------------
def reference_forward(time_features, time_emb, adj_index, t_sparse_indices,
                      t_sparse_val, attn_kernel_time, node_size, time_sizeT,
                      triple_size):
    D = time_features.shape[1]
    feat_act = jnp.tanh(time_features)
    ts = jnp.zeros((triple_size, D), jnp.float32).at[t_sparse_indices[:, 0]].add(
        t_sparse_val[:, None] * time_emb[t_sparse_indices[:, 1]])
    ts_n = ts / jnp.maximum(jnp.sqrt(jnp.sum(ts * ts, axis=1, keepdims=True)), 1e-12)
    neighs = feat_act[adj_index[:, 1]]
    neighs = neighs - 2.0 * jnp.sum(neighs * ts_n, axis=1, keepdims=True) * ts_n
    att1 = jnp.sum(neighs * attn_kernel_time[:, 0][None, :], axis=1)
    rows = adj_index[:, 0]
    rmax = jax.ops.segment_max(att1, rows, num_segments=node_size)
    ex = jnp.exp(att1 - rmax[rows])
    den = jax.ops.segment_sum(ex, rows, num_segments=node_size)
    w = ex / den[rows]
    agg = jax.ops.segment_sum(neighs * w[:, None], rows, num_segments=node_size)
    return jnp.concatenate([feat_act, jnp.tanh(2.0 * agg)], axis=1)


# ----------------------------------------------------------------------------
# Deterministic parameter init (xavier-normal-like, as OverAll.init_emb)
# ----------------------------------------------------------------------------
def init_emb(key, *size):
    std = (2.0 / (size[0] + size[-1])) ** 0.5
    return std * jax.random.normal(key, size, dtype=jnp.float32)


if __name__ == "__main__":
    # node_size=32, time_sizeT=16, triple_size=64, dim=32, depth=1, attn_heads=1
    N, TS_T, T, D = 32, 16, 64, 32

    key = jax.random.PRNGKey(0)
    k1, k2, k3, k4 = jax.random.split(key, 4)
    time_features = jax.random.normal(k1, (N, D), jnp.float32)   # inputs[5]
    time_emb = jax.random.normal(k2, (TS_T, D), jnp.float32)     # inputs[6]

    # edge list: every node appears as a destination; (row, col) pairs are unique
    # (the duplicate-free case in which the original sparse.softmax + scatter_add
    # pairing is well defined).
    e = jnp.arange(T, dtype=jnp.int32)
    rows = e % N
    cols = (rows + 1 + (e // N) * 3) % N
    adj_index = jnp.stack([rows, cols], axis=1)                  # inputs[2]

    t_sparse_indices = jnp.stack(
        [e, jax.random.randint(k3, (T,), 0, TS_T, dtype=jnp.int32)], axis=1)  # inputs[8]
    t_sparse_val = jax.random.uniform(k4, (T,), jnp.float32, 0.1, 1.0)        # inputs[9]

    # parameters (shapes from GraphAttention2.__init__ with depth=1, dim=D)
    pk = jax.random.split(jax.random.PRNGKey(42), 5)
    attn_kernel_time = init_emb(pk[0], D, 1)        # attn_kernels[0][0][1]
    _gate_kernel3 = init_emb(pk[1], 2 * D, 2 * D)   # does not feed the returned outputs_time
    _gate_kernel = init_emb(pk[2], 2 * D, 2 * D)    # parity only (unused by the return)
    _proxy = init_emb(pk[3], 64, 2 * D)             # parity only (unused by the return)
    _bias = init_emb(pk[4], 1, 2 * D)               # parity only (unused by the return)

    out = graph_attention2_forward(time_features, time_emb, adj_index,
                                   t_sparse_indices, t_sparse_val,
                                   attn_kernel_time, N, TS_T, T)
    out = jax.block_until_ready(out)

    ref = reference_forward(time_features, time_emb, adj_index, t_sparse_indices,
                            t_sparse_val, attn_kernel_time, N, TS_T, T)
    assert out.shape == (N, 2 * D)
    np.testing.assert_allclose(np.asarray(out), np.asarray(ref),
                               rtol=1e-4, atol=1e-4)
    print("KERNEL_OK")
</pallas_src>

<mosaic_0001>
module attributes {stable_mosaic.version = 11 : i64} {
  func.func @gat2_time_kernel(%arg0: i32, %arg1: i32, %arg2: memref<32x128xf32, #tpu.memory_space<vmem>>, %arg3: memref<128x128xf32, #tpu.memory_space<vmem>>, %arg4: memref<128x32xbf16, #tpu.memory_space<vmem>>, %arg5: memref<32x128xbf16, #tpu.memory_space<vmem>>, %arg6: memref<1x128xf32, #tpu.memory_space<vmem>>, %arg7: memref<32x128xf32, #tpu.memory_space<vmem>>, %arg8: memref<32x128xf32, #tpu.memory_space<vmem>>) attributes {dimension_semantics = [#tpu.dimension_semantics<parallel>, #tpu.dimension_semantics<arbitrary>], iteration_bounds = array<i64: 1, 1>, scalar_prefetch = 0 : i64, scratch_operands = 1 : i64, tpu.core_type = #tpu.core_type<tc>, window_params = [{pipeline_mode = #tpu.pipeline_mode<synchronous>, transform_indices = @transform_0, window_bounds = array<i64: 32, 128>}, {transform_indices = @transform_1, window_bounds = array<i64: 128, 128>}, {transform_indices = @transform_2, window_bounds = array<i64: 128, 32>}, {transform_indices = @transform_3, window_bounds = array<i64: 32, 128>}, {pipeline_mode = #tpu.pipeline_mode<synchronous>, transform_indices = @transform_4, window_bounds = array<i64: 1, 128>}, {transform_indices = @transform_5, window_bounds = array<i64: 32, 128>}]} {
    %c0_i32 = arith.constant 0 : i32
    %0 = arith.cmpi eq, %arg1, %c0_i32 : i32
    %1 = arith.extui %0 : i1 to i32
    %c0_i32_0 = arith.constant 0 : i32
    %2 = arith.cmpi ne, %1, %c0_i32_0 : i32
    scf.if %2 {
      %cst_22 = arith.constant 0.000000e+00 : f32
      %48 = vector.broadcast %cst_22 : f32 to vector<32x128xf32>
      %c0_23 = arith.constant 0 : index
      %c0_24 = arith.constant 0 : index
      %49 = vector.load %arg8[%c0_23, %c0_24] : memref<32x128xf32, #tpu.memory_space<vmem>>, vector<32x128xf32>
      tpu.vector_store %arg8[%c0_23, %c0_24], %48 {strides = array<i32>} : memref<32x128xf32, #tpu.memory_space<vmem>>, vector<32x128xf32>,
    } else {
    }
    %c0 = arith.constant 0 : index
    %c0_1 = arith.constant 0 : index
    %3 = vector.load %arg2[%c0, %c0_1] : memref<32x128xf32, #tpu.memory_space<vmem>>, vector<32x128xf32>
    %c0_2 = arith.constant 0 : index
    %c0_3 = arith.constant 0 : index
    %4 = vector.load %arg4[%c0_2, %c0_3] : memref<128x32xbf16, #tpu.memory_space<vmem>>, vector<128x32xbf16>
    %5 = arith.extf %4 : vector<128x32xbf16> to vector<128x32xf32>
    %cst = arith.constant dense<0.000000e+00> : vector<128x128xf32>
    %6 = tpu.matmul %5, %3, %cst {dimension_numbers = #tpu.dot_dimension_numbers<[1], [0], [0], [1], [0, 0, 1, 1], [], []>} : vector<128x32xf32>, vector<32x128xf32>, vector<128x128xf32> -> vector<128x128xf32>
    %c0_4 = arith.constant 0 : index
    %c0_5 = arith.constant 0 : index
    %7 = vector.load %arg3[%c0_4, %c0_5] : memref<128x128xf32, #tpu.memory_space<vmem>>, vector<128x128xf32>
    %8 = arith.mulf %7, %7 : vector<128x128xf32>
    %cst_6 = arith.constant dense<0.000000e+00> : vector<128xf32>
    %9 = vector.multi_reduction <add>, %8, %cst_6 [1] : vector<128x128xf32> to vector<128xf32>
    %10 = vector.shape_cast %9 : vector<128xf32> to vector<128x1xf32>
    %cst_7 = arith.constant 1.000000e-24 : f32
    %11 = vector.broadcast %cst_7 : f32 to vector<128x1xf32>
    %12 = arith.maximumf %10, %11 : vector<128x1xf32>
    %13 = math.rsqrt %12 : vector<128x1xf32>
    %14 = vector.broadcast %13 : vector<128x1xf32> to vector<128x128xf32>
    %15 = arith.mulf %7, %14 : vector<128x128xf32>
    %16 = arith.mulf %6, %15 : vector<128x128xf32>
    %cst_8 = arith.constant dense<0.000000e+00> : vector<128xf32>
    %17 = vector.multi_reduction <add>, %16, %cst_8 [1] : vector<128x128xf32> to vector<128xf32>
    %18 = vector.shape_cast %17 : vector<128xf32> to vector<128x1xf32>
    %cst_9 = arith.constant 2.000000e+00 : f32
    %19 = vector.broadcast %cst_9 : f32 to vector<128x1xf32>
    %20 = arith.mulf %19, %18 : vector<128x1xf32>
    %21 = vector.broadcast %20 : vector<128x1xf32> to vector<128x128xf32>
    %22 = arith.mulf %21, %15 : vector<128x128xf32>
    %23 = arith.subf %6, %22 : vector<128x128xf32>
    %c0_10 = arith.constant 0 : index
    %c0_11 = arith.constant 0 : index
    %24 = vector.load %arg6[%c0_10, %c0_11] : memref<1x128xf32, #tpu.memory_space<vmem>>, vector<1x128xf32>
    %25 = vector.broadcast %24 : vector<1x128xf32> to vector<128x128xf32>
    %26 = arith.mulf %23, %25 : vector<128x128xf32>
    %cst_12 = arith.constant dense<0.000000e+00> : vector<128xf32>
    %27 = vector.multi_reduction <add>, %26, %cst_12 [1] : vector<128x128xf32> to vector<128xf32>
    %28 = vector.shape_cast %27 : vector<128xf32> to vector<128x1xf32>
    %29 = math.exp %28 : vector<128x1xf32>
    %30 = tpu.iota {dimensions = array<i32: 1>} : vector<1x128xi32>
    %c32_i32 = arith.constant 32 : i32
    %31 = vector.broadcast %c32_i32 : i32 to vector<1x128xi32>
    %32 = arith.cmpi eq, %30, %31 : vector<1x128xi32>
    %33 = arith.extui %32 : vector<1x128xi1> to vector<1x128xi32>
    %34 = arith.sitofp %33 : vector<1x128xi32> to vector<1x128xf32>
    %35 = vector.broadcast %34 : vector<1x128xf32> to vector<128x128xf32>
    %36 = arith.addf %23, %35 : vector<128x128xf32>
    %37 = vector.broadcast %29 : vector<128x1xf32> to vector<128x128xf32>
    %38 = arith.mulf %36, %37 : vector<128x128xf32>
    %c0_13 = arith.constant 0 : index
    %c0_14 = arith.constant 0 : index
    %39 = vector.load %arg5[%c0_13, %c0_14] : memref<32x128xbf16, #tpu.memory_space<vmem>>, vector<32x128xbf16>
    %40 = arith.extf %39 : vector<32x128xbf16> to vector<32x128xf32>
    %c0_15 = arith.constant 0 : index
    %c0_16 = arith.constant 0 : index
    %41 = vector.load %arg8[%c0_15, %c0_16] : memref<32x128xf32, #tpu.memory_space<vmem>>, vector<32x128xf32>
    %cst_17 = arith.constant dense<0.000000e+00> : vector<32x128xf32>
    %42 = tpu.matmul %40, %38, %cst_17 {dimension_numbers = #tpu.dot_dimension_numbers<[1], [0], [0], [1], [0, 0, 1, 1], [], []>} : vector<32x128xf32>, vector<128x128xf32>, vector<32x128xf32> -> vector<32x128xf32>
    %43 = arith.addf %41, %42 : vector<32x128xf32>
    %c0_18 = arith.constant 0 : index
    %c0_19 = arith.constant 0 : index
    %44 = vector.load %arg8[%c0_18, %c0_19] : memref<32x128xf32, #tpu.memory_space<vmem>>, vector<32x128xf32>
    tpu.vector_store %arg8[%c0_18, %c0_19], %43 {strides = array<i32>} : memref<32x128xf32, #tpu.memory_space<vmem>>, vector<32x128xf32>,
    %c0_i32_20 = arith.constant 0 : i32
    %45 = arith.cmpi eq, %arg1, %c0_i32_20 : i32
    %46 = arith.extui %45 : i1 to i32
    %c0_i32_21 = arith.constant 0 : i32
    %47 = arith.cmpi ne, %46, %c0_i32_21 : i32
    scf.if %47 {
      %c0_22 = arith.constant 0 : index
      %c0_23 = arith.constant 0 : index
      %48 = vector.load %arg8[%c0_22, %c0_23] : memref<32x128xf32, #tpu.memory_space<vmem>>, vector<32x128xf32>
      %49 = vector.extract_strided_slice %48 {offsets = [0, 32], sizes = [32, 1], strides = [1, 1]} : vector<32x128xf32> to vector<32x1xf32>
      %cst_24 = arith.constant 0.000000e+00 : f32
      %50 = vector.broadcast %cst_24 : f32 to vector<32x1xf32>
      %51 = arith.cmpf oeq, %49, %50 : vector<32x1xf32>
      %cst_25 = arith.constant 1.000000e+00 : f32
      %52 = vector.broadcast %cst_25 : f32 to vector<32x1xf32>
      %53 = arith.select %51, %52, %49 : vector<32x1xi1>, vector<32x1xf32>
      %54 = tpu.reciprocal %53 : vector<32x1xf32> -> vector<32x1xf32>
      %cst_26 = arith.constant 2.000000e+00 : f32
      %55 = vector.broadcast %cst_26 : f32 to vector<32x128xf32>
      %56 = arith.mulf %55, %48 : vector<32x128xf32>
      %57 = vector.broadcast %54 : vector<32x1xf32> to vector<32x128xf32>
      %58 = arith.mulf %56, %57 : vector<32x128xf32>
      %59 = math.tanh %58 : vector<32x128xf32>
      %c0_27 = arith.constant 0 : index
      %c0_28 = arith.constant 0 : index
      %60 = vector.load %arg7[%c0_27, %c0_28] : memref<32x128xf32, #tpu.memory_space<vmem>>, vector<32x128xf32>
      tpu.vector_store %arg7[%c0_27, %c0_28], %59 {strides = array<i32>} : memref<32x128xf32, #tpu.memory_space<vmem>>, vector<32x128xf32>,
    } else {
    }
    return
  }
  func.func @transform_0(%arg0: i32, %arg1: i32) -> (i32, i32) {
    %c0_i32 = arith.constant 0 : i32
    %c0_i32_0 = arith.constant 0 : i32
    %c0_i32_1 = arith.constant 0 : i32
    return %c0_i32, %c0_i32_0 : i32, i32
  }
  func.func @transform_1(%arg0: i32, %arg1: i32) -> (i32, i32) {
    %c0_i32 = arith.constant 0 : i32
    %c0_i32_0 = arith.constant 0 : i32
    return %arg1, %c0_i32 : i32, i32
  }
  func.func @transform_2(%arg0: i32, %arg1: i32) -> (i32, i32) {
    %c0_i32 = arith.constant 0 : i32
    %c0_i32_0 = arith.constant 0 : i32
    return %arg1, %c0_i32 : i32, i32
  }
  func.func @transform_3(%arg0: i32, %arg1: i32) -> (i32, i32) {
    %c0_i32 = arith.constant 0 : i32
    return %arg0, %arg1 : i32, i32
  }
  func.func @transform_4(%arg0: i32, %arg1: i32) -> (i32, i32) {
    %c0_i32 = arith.constant 0 : i32
    %c0_i32_0 = arith.constant 0 : i32
    %c0_i32_1 = arith.constant 0 : i32
    return %c0_i32, %c0_i32_0 : i32, i32
  }
  func.func @transform_5(%arg0: i32, %arg1: i32) -> (i32, i32) {
    %c0_i32 = arith.constant 0 : i32
    %c0_i32_0 = arith.constant 0 : i32
    return %arg0, %c0_i32 : i32, i32
  }
}

</mosaic_0001>

<bundles_post_ra>
// kernel: tpu_custom_call.1
= control target key start
LH: loop header
LB: loop body
LE: loop exit
PB: predicated region body
PF: predicated region fallthrough
CT: control target
= control target key end

     0   :  { %10 = vsyncpa [#allocation4], 0  ;;  %s1780_s0 = inlined_call_operand.vmem [shape: f32[32,128], index: 0, kind: input, shape index: {}]   ;;  %s1781_s1 = inlined_call_operand.hbm [shape: f32[128,128], index: 1, kind: input, shape index: {}]   ;;  %s1782_s2 = inlined_call_operand.vmem [shape: bf16[128,32], index: 2, kind: input, shape index: {}]   ;;  %s1783_s3 = inlined_call_operand.vmem [shape: bf16[32,128], index: 3, kind: input, shape index: {}]   ;;  %s1784_s4 = inlined_call_operand.vmem [shape: f32[1,128], index: 4, kind: input, shape index: {}]   ;;  %s1785_s5 = inlined_call_operand.hbm [shape: f32[32,128], index: 5, kind: output, shape index: {}]  }
   0x1   :  { %11 = vsyncpa [#allocation5], 0  ;;  %s18_s20 = sshll.u32 %s1781_s1, 4  ;;  %s1074_s21 = smov [#allocation3]   ;;  %s19_s20 = int_to_ptr.hbm [resolvable:$true] %s18_s20 }
   0x2   :  { %s20_s22 = sshll.u32 %s1074_s21, 4  ;;  %s1075_s23 = smov 128   ;;  %s21_s22 = int_to_ptr.vmem [resolvable:$true] %s20_s22 }
   0x3   :  { %s1076_s24 = smov 8  }
   0x4   :  { %26 = dma.hbm_to_vmem [thread:$0]  %s19_s20, 2048, %s21_s22, [#allocation4], %s1075_s23, %s1075_s23, %s1076_s24  }
   0x5   :  { %1070 = dma.done.wait [#allocation4], 2048  }
   0x6   :  { %1071 = vsyncadd [#allocation4], 4294965248  ;;  %v48_v0 = vld [vmem:[%s1780_s0 + $0x18] sm:$0xff]  ;;  %v1121_v2 = vld [vmem:[#allocation3 + $0x68] sm:$0xff]  ;;  %vm81_vm0 = vcmask 261120   ;;  %s830_s30 = sshll.u32 %s1785_s5, 4  ;;  %s831_s30 = int_to_ptr.hbm [resolvable:$true] %s830_s30 }
   0x7   :  { %v1119_v1 = vld [vmem:[#allocation3 + $0x78] sm:$0xff]  ;;  %908 = vmatpush.msra.mxu2 %v48_v0  ;;  %909 = vmatpush.msra.mxu3 %v48_v0  ;;  %v224_v4 = vmul.f32 %v1121_v2, %v1121_v2  ;;  %v47_v6 = vld [vmem:[%s1780_s0 + $0x10] sm:$0xff]  ;;  %v46_v9 = vld [vmem:[%s1780_s0 + $0x8] sm:$0xff] }
   0x8   :  { %v226_v3 = vmul.f32 %v1119_v1, %v1119_v1  ;;  %v1127_v5 = vld [vmem:[#allocation3 + $0x58] sm:$0xff]  ;;  %142 = vmatpush.msra.mxu0 %v48_v0  ;;  %v905_v10 = vld [vmem:[%s1782_s2 + $0x30] sm:$0xff]   ;;  %v1145_v12 = vld [vmem:[#allocation3 + $0x60] sm:$0xff] }
   0x9   :  { %v222_v7 = vmul.f32 %v1127_v5, %v1127_v5  ;;  %v902_v8 = vld [vmem:[%s1782_s2 + $0x18] sm:$0xff]   ;;  %253 = vadd.xlane.f32.xlu1 %v224_v4  ;;  %910 = vmatpush.msra.mxu2 %v47_v6  ;;  %v1143_v11 = vld [vmem:[#allocation3 + $0x70] sm:$0xff]  ;;  %v45_v13 = vld [vmem:[%s1780_s0] sm:$0xff]  ;;  %v886_v17 = vunpack.c.l.bf16 %v905_v10  ;;  %v223_v19 = vmul.f32 %v1145_v12, %v1145_v12  ;;  %v887_v26 = vunpack.c.h.bf16 %v905_v10 }
   0xa   :  { %257 = vadd.xlane.f32.xlu0 %v226_v3  ;;  %911 = vmatpush.msra.mxu3 %v47_v6  ;;  %v874_v14 = vunpack.c.l.bf16 %v902_v8  ;;  %v1150_v15 = vld [vmem:[#allocation3 + $0x50] sm:$0xff]  ;;  %v861_v16 = vld [vmem:[%s1782_s2] sm:$0xff]   ;;  %v225_v18 = vmul.f32 %v1143_v11, %v1143_v11  ;;  %v1164_v22 = vld [vmem:[#allocation3 + $0x48] sm:$0xff]  ;;  %v875_v24 = vunpack.c.h.bf16 %v902_v8 }
   0xb   :  { %249 = vadd.xlane.f32.xlu2 %v222_v7  ;;  %143 = vmatpush.msra.mxu0 %v47_v6  ;;  %v221_v20 = vmul.f32 %v1150_v15, %v1150_v15  ;;  %v862_v21 = vunpack.c.l.bf16 %v861_v16  ;;  %v1166_v23 = vld [vmem:[#allocation3 + $0x40] sm:$0xff]  ;;  %v1168_v25 = vld [vmem:[#allocation3 + $0x38] sm:$0xff]  ;;  %v220_v27 = vmul.f32 %v1164_v22, %v1164_v22  ;;  %v863_v30 = vunpack.c.h.bf16 %v861_v16  ;;  %v1185_v33 = vld [vmem:[#allocation3 + $0x30] sm:$0xff] }
   0xc   :  { %912 = vmatpush.msra.mxu2 %v46_v9  ;;  %913 = vmatpush.msra.mxu3 %v46_v9  ;;  %v219_v28 = vmul.f32 %v1166_v23, %v1166_v23  ;;  %v218_v29 = vmul.f32 %v1168_v25, %v1168_v25  ;;  %v903_v31 = vld [vmem:[%s1782_s2 + $0x20] sm:$0xff]   ;;  %v906_v32 = vld [vmem:[%s1782_s2 + $0x38] sm:$0xff]   ;;  %v1187_v34 = vld [vmem:[#allocation3 + $0x28] sm:$0xff]  ;;  %v217_v39 = vmul.f32 %v1185_v33, %v1185_v33 }
   0xd   :  { %144 = vmatpush.msra.mxu0 %v46_v9  ;;  %v878_v35 = vunpack.c.l.bf16 %v903_v31  ;;  %v1189_v36 = vld [vmem:[#allocation3 + $0x20] sm:$0xff]  ;;  %v900_v37 = vld [vmem:[%s1782_s2 + $0x8] sm:$0xff]   ;;  %v890_v38 = vunpack.c.l.bf16 %v906_v32  ;;  %v216_v40 = vmul.f32 %v1187_v34, %v1187_v34  ;;  %v1203_v43 = vld [vmem:[#allocation3 + $0x18] sm:$0xff]  ;;  %v879_v45 = vunpack.c.h.bf16 %v903_v31 }
   0xe   :  { %914 = vmatpush.msra.mxu2 %v45_v13  ;;  %915 = vmatpush.msra.mxu3 %v45_v13  ;;  %v215_v41 = vmul.f32 %v1189_v36, %v1189_v36  ;;  %v866_v42 = vunpack.c.l.bf16 %v900_v37  ;;  %v1205_v44 = vld [vmem:[#allocation3 + $0x10] sm:$0xff]  ;;  %v1207_v46 = vld [vmem:[#allocation3 + $0x8] sm:$0xff]  ;;  %v891_v47 = vunpack.c.h.bf16 %v906_v32  ;;  %v214_v48 = vmul.f32 %v1203_v43, %v1203_v43  ;;  %v1221_v53 = vld [vmem:[#allocation3] sm:$0xff] }
   0xf   :  { %849 = vmatmul.msk.f32.vlgmr.msra.gmra.mxu2 %vm81_vm0, %v874_v14  ;;  %855 = vmatmul.msk.f32.vlgmr.msra.gmra.mxu3 %vm81_vm0, %v886_v17  ;;  %v213_v49 = vmul.f32 %v1205_v44, %v1205_v44  ;;  %v212_v50 = vmul.f32 %v1207_v46, %v1207_v46  ;;  %v867_v51 = vunpack.c.h.bf16 %v900_v37  ;;  %v904_v52 = vld [vmem:[%s1782_s2 + $0x28] sm:$0xff]   ;;  %v901_v55 = vld [vmem:[%s1782_s2 + $0x10] sm:$0xff]   ;;  %v211_v56 = vmul.f32 %v1221_v53, %v1221_v53 }
  0x10   :  { %145 = vmatpush.msra.mxu0 %v45_v13  ;;  %v882_v54 = vunpack.c.l.bf16 %v904_v52  ;;  %v870_v57 = vunpack.c.l.bf16 %v901_v55  ;;  %v883_v58 = vunpack.c.h.bf16 %v904_v52  ;;  %v871_v59 = vunpack.c.h.bf16 %v901_v55 }
  0x11   :  { %251 = vadd.xlane.f32.xlu1 %v223_v19  ;;  %843 = vmatmul.msk.f32.vlgmr.msra.gmra.mxu0 %vm81_vm0, %v862_v21 }
  0x12   :  { %255 = vadd.xlane.f32.xlu0 %v225_v18 }
  0x13   :  { %247 = vadd.xlane.f32.xlu2 %v221_v20 }
  0x17   :  { %850 = vmatmul.msk.f32.gmra.mxu2 %vm81_vm0, %v875_v24  ;;  %856 = vmatmul.msk.f32.gmra.mxu3 %vm81_vm0, %v887_v26 }
  0x19   :  { %243 = vadd.xlane.f32.xlu1 %v219_v28  ;;  %844 = vmatmul.msk.f32.gmra.mxu0 %vm81_vm0, %v863_v30 }
  0x1a   :  { %245 = vadd.xlane.f32.xlu0 %v220_v27 }
  0x1b   :  { %241 = vadd.xlane.f32.xlu2 %v218_v29 }
  0x1f   :  { %851 = vmatmul.msk.f32.gmra.mxu2 %vm81_vm0, %v878_v35  ;;  %857 = vmatmul.msk.f32.gmra.mxu3 %vm81_vm0, %v890_v38 }
  0x21   :  { %237 = vadd.xlane.f32.xlu1 %v216_v40  ;;  %845 = vmatmul.msk.f32.gmra.mxu0 %vm81_vm0, %v866_v42 }
  0x22   :  { %239 = vadd.xlane.f32.xlu0 %v217_v39 }
  0x23   :  { %235 = vadd.xlane.f32.xlu2 %v215_v41 }
  0x27   :  { %852 = vmatmul.msk.f32.gmra.mxu2 %vm81_vm0, %v879_v45  ;;  %858 = vmatmul.msk.f32.gmra.mxu3 %vm81_vm0, %v891_v47 }
  0x29   :  { %231 = vadd.xlane.f32.xlu1 %v213_v49  ;;  %846 = vmatmul.msk.f32.gmra.mxu0 %vm81_vm0, %v867_v51 }
  0x2a   :  { %233 = vadd.xlane.f32.xlu0 %v214_v48 }
  0x2b   :  { %229 = vadd.xlane.f32.xlu2 %v212_v50 }
  0x2f   :  { %853 = vmatmul.msk.f32.gmra.mxu2 %vm81_vm0, %v882_v54 }
  0x31   :  { %847 = vmatmul.msk.f32.gmra.mxu0 %vm81_vm0, %v870_v57 }
  0x32   :  { %227 = vadd.xlane.f32.xlu0 %v211_v56 }
  0x37   :  { %854 = vmatmul.msk.f32.gmra.mxu2 %vm81_vm0, %v883_v58 }
  0x39   :  { %848 = vmatmul.msk.f32.gmra.mxu0 %vm81_vm0, %v871_v59 }
  0x7c   :  { %v254_v61 = vpop.xlane.xlu1 %253 }
  0x7d   :  { %v258_v60 = vpop.xlane.xlu0 %257  ;;  %v272_v62 = vmax.f32 %v254_v61, 1e-24 }
  0x7e   :  { %v250_v63 = vpop.xlane.xlu2 %249  ;;  %v1234_v9 = vmax.f32 %v258_v60, 1e-24 }
  0x7f   :  { %942 = vrsqrt.f32 %v272_v62  ;;  %v1248_v29 = vmax.f32 %v250_v63, 1e-24  ;;  %vm411_vm1 = vweird.f32 %v272_v62 }
  0x80   :  { %vm431_vm10 = vweird.f32 %v1234_v9 }
  0x84   :  { %v252_v3 = vpop.xlane.xlu1 %251 }
  0x85   :  { %v256_v0 = vpop.xlane.xlu0 %255  ;;  %v271_v6 = vmax.f32 %v252_v3, 1e-24  ;;  %v943_v8 = vpop.eup %942 }
  0x86   :  { %v1232_v4 = vmax.f32 %v256_v0, 1e-24  ;;  %v248_v7 = vpop.xlane.xlu2 %247  ;;  %v406_v10 = vmul.f32 %v943_v8, %v272_v62  ;;  %vm412_vm2 = vweird.f32 %v943_v8 }
  0x87   :  { %v1240_v18 = vmax.f32 %v248_v7, 1e-24  ;;  %vm1261_vm3 = vmor %vm411_vm1, %vm412_vm2  ;;  %vm401_vm4 = vweird.f32 %v271_v6  ;;  %vm391_vm2 = vweird.f32 %v1248_v29 }
  0x88   :  { %944 = vrsqrt.f32 %v1232_v4  ;;  %v407_v13 = vmul.f32 %v943_v8, %v406_v10  ;;  %vm421_vm7 = vweird.f32 %v1232_v4 }
  0x89   :  { %946 = vrsqrt.f32 %v271_v6  ;;  %vm381_vm13 = vweird.f32 %v1240_v18 }
  0x8a   :  { %948 = vrsqrt.f32 %v1234_v9  ;;  %v408_v14 = vmul.f32 0.5, %v407_v13 }
  0x8c   :  { %v409_v26 = vsub.f32 1.5, %v408_v14  ;;  %v244_v38 = vpop.xlane.xlu1 %243 }
  0x8d   :  { %v246_v16 = vpop.xlane.xlu0 %245  ;;  %v1285_v59 = vmax.f32 %v244_v38, 1e-24 }
  0x8e   :  { %v1238_v17 = vpop.eup %944  ;;  %v1242_v19 = vmax.f32 %v246_v16, 1e-24  ;;  %v242_v20 = vpop.xlane.xlu2 %241  ;;  %v410_v41 = vmul.f32 %v943_v8, %v409_v26 }
  0x8f   :  { %v947_v21 = vpop.eup %946  ;;  %v416_v24 = vmul.f32 %v1238_v17, %v1232_v4  ;;  %v1257_v39 = vmax.f32 %v242_v20, 1e-24  ;;  %v1270_v51 = vpop.f32.mrf.mxu0  ;;  %vm422_vm8 = vweird.f32 %v1238_v17 }
  0x90   :  { %v396_v27 = vmul.f32 %v947_v21, %v271_v6  ;;  %v1246_v28 = vpop.eup %948  ;;  %950 = vrsqrt.f32 %v1242_v19  ;;  %vm402_vm5 = vweird.f32 %v947_v21  ;;  %v414_v56 = vsel %vm1261_vm3, %v943_v8, %v410_v41  ;;  %vm1323_vm9 = vmor %vm421_vm7, %vm422_vm8 }
  0x91   :  { %952 = vrsqrt.f32 %v1240_v18  ;;  %v417_v31 = vmul.f32 %v1238_v17, %v416_v24  ;;  %v426_v35 = vmul.f32 %v1246_v28, %v1234_v9  ;;  %vm1279_vm6 = vmor %vm401_vm4, %vm402_vm5  ;;  %v1292_v63 = vmul.f32 %v414_v56, %v1121_v2 }
  0x92   :  { %v397_v30 = vmul.f32 %v947_v21, %v396_v27  ;;  %v1253_v32 = vpop.f32.mrf.mxu2  ;;  %v1259_v40 = vpop.f32.mrf.mxu3  ;;  %954 = vrsqrt.f32 %v1248_v29  ;;  %vm432_vm11 = vweird.f32 %v1246_v28  ;;  %vm371_vm14 = vweird.f32 %v1242_v19 }
  0x93   :  { %v418_v49 = vmul.f32 0.5, %v417_v31  ;;  %v427_v55 = vmul.f32 %v1246_v28, %v426_v35  ;;  %956 = vrsqrt.f32 %v1257_v39  ;;  %vm1360_vm12 = vmor %vm431_vm10, %vm432_vm11  ;;  %vm351_vm5 = vweird.f32 %v1257_v39 }
  0x94   :  { %v398_v37 = vmul.f32 0.5, %v397_v30  ;;  %v238_v20 = vpop.xlane.xlu1 %237  ;;  %vm361_vm11 = vweird.f32 %v1285_v59 }
  0x95   :  { %v240_v45 = vpop.xlane.xlu0 %239  ;;  %v419_v60 = vsub.f32 1.5, %v418_v49  ;;  %v428_v6 = vmul.f32 0.5, %v427_v55 }
  0x96   :  { %v1266_v47 = vmax.f32 %v240_v45, 1e-24  ;;  %v1268_v48 = vpop.eup %950  ;;  %v399_v50 = vsub.f32 1.5, %v398_v37  ;;  %v236_v52 = vpop.xlane.xlu2 %235 }
  0x97   :  { %v1272_v54 = vpop.eup %952  ;;  %v366_v58 = vmul.f32 %v1268_v48, %v1242_v19  ;;  %v1296_v7 = vmax.f32 %v236_v52, 1e-24  ;;  %v420_v31 = vmul.f32 %v1238_v17, %v419_v60  ;;  %v1333_v38 = vpop.f32.mrf.mxu0  ;;  %vm372_vm15 = vweird.f32 %v1268_v48 }
  0x98   :  { %958 = vrsqrt.f32 %v1266_v47  ;;  %v376_v61 = vmul.f32 %v1272_v54, %v1240_v18  ;;  %v400_v0 = vmul.f32 %v947_v21, %v399_v50  ;;  %v1294_v3 = vpop.eup %954  ;;  %v1341_v50 = vmax.f32 %v238_v20, 1e-24  ;;  %vm1394_vm1 = vmor %vm371_vm14, %vm372_vm15 }
  0x99   :  { %v1306_v14 = vpop.eup %956  ;;  %v367_v16 = vmul.f32 %v1268_v48, %v366_v58  ;;  %960 = vrsqrt.f32 %v1285_v59  ;;  %v424_v55 = vsel %vm1323_vm9, %v1238_v17, %v420_v31  ;;  %vm382_vm0 = vweird.f32 %v1272_v54 }
  0x9a   :  { %v1289_v62 = vpop.f32.mrf.mxu2  ;;  %v1298_v8 = vpop.f32.mrf.mxu3  ;;  %v404_v2 = vsel %vm1279_vm6, %v947_v21, %v400_v0  ;;  %v377_v30 = vmul.f32 %v1272_v54, %v376_v61  ;;  %v429_v21 = vsub.f32 1.5, %v428_v6  ;;  %962 = vrsqrt.f32 %v1296_v7  ;;  %vm1413_vm3 = vmor %vm381_vm13, %vm382_vm0 }
  0x9b   :  { %v464_v13 = vmul.f32 %v1292_v63, %v1298_v8  ;;  %v1312_v26 = vmul.f32 %v404_v2, %v1145_v12  ;;  %v386_v12 = vmul.f32 %v1294_v3, %v1248_v29  ;;  %v346_v37 = vmul.f32 %v1306_v14, %v1257_v39 }
  0x9c   :  { %v368_v4 = vmul.f32 0.5, %v367_v16  ;;  %v378_v49 = vmul.f32 0.5, %v377_v30  ;;  %v1353_v58 = vmul.f32 %v424_v55, %v1143_v11  ;;  %v430_v60 = vmul.f32 %v1246_v28, %v429_v21  ;;  %v232_v21 = vpop.xlane.xlu1 %231 }
  0x9d   :  { %v234_v10 = vpop.xlane.xlu0 %233  ;;  %493 = vadd.xlane.f32.xlu0 %v464_v13  ;;  %v463_v45 = vmul.f32 %v1312_v26, %v1259_v40  ;;  %v387_v17 = vmul.f32 %v1294_v3, %v386_v12  ;;  %v347_v6 = vmul.f32 %v1306_v14, %v346_v37  ;;  %vm392_vm4 = vweird.f32 %v1294_v3 }
  0x9e   :  { %v1309_v24 = vmax.f32 %v234_v10, 1e-24  ;;  %v1314_v27 = vpop.eup %958  ;;  %v230_v41 = vpop.xlane.xlu2 %229  ;;  %v369_v2 = vsub.f32 1.5, %v368_v4  ;;  %v379_v30 = vsub.f32 1.5, %v378_v49  ;;  %v434_v35 = vsel %vm1360_vm12, %v1246_v28, %v430_v60  ;;  %vm1475_vm12 = vmor %vm391_vm2, %vm392_vm4 }
  0x9f   :  { %v336_v42 = vmul.f32 %v1314_v27, %v1266_v47  ;;  %v1348_v56 = vmax.f32 %v230_v41, 1e-24  ;;  %491 = vadd.xlane.f32.xlu1 %v463_v45  ;;  %v1356_v61 = vpop.eup %960  ;;  %v348_v12 = vmul.f32 0.5, %v347_v6  ;;  %v388_v41 = vmul.f32 0.5, %v387_v17  ;;  %v1400_v55 = vpop.f32.mrf.mxu0 }
  0xa0   :  { %964 = vrsqrt.f32 %v1309_v24  ;;  %v1366_v13 = vpop.eup %962  ;;  %v356_v31 = vmul.f32 %v1356_v61, %v1285_v59  ;;  %v370_v45 = vmul.f32 %v1268_v48, %v369_v2  ;;  %v1398_v28 = vmax.f32 %v232_v21, 1e-24 }
  0xa1   :  { %v337_v11 = vmul.f32 %v1314_v27, %v336_v42  ;;  %966 = vrsqrt.f32 %v1341_v50  ;;  %v316_v37 = vmul.f32 %v1366_v13, %v1296_v7  ;;  %v1405_v0 = vmul.f32 %v434_v35, %v1119_v1 }
  0xa2   :  { %v1343_v52 = vpop.f32.mrf.mxu2  ;;  %v1350_v57 = vpop.f32.mrf.mxu3  ;;  %968 = vrsqrt.f32 %v1348_v56  ;;  %v380_v17 = vmul.f32 %v1272_v54, %v379_v30  ;;  %v357_v6 = vmul.f32 %v1356_v61, %v356_v31  ;;  %v349_v1 = vsub.f32 1.5, %v348_v12 }
  0xa3   :  { %1793 = vst [vmem:[#allocation9_spill] sm:$0xff] %v1350_v57  ;;  %v465_v20 = vmul.f32 %v1353_v58, %v1350_v57  ;;  %v338_v4 = vmul.f32 0.5, %v337_v11  ;;  %v317_v11 = vmul.f32 %v1366_v13, %v316_v37  ;;  %v389_v18 = vsub.f32 1.5, %v388_v41 }
  0xa4   :  { %v374_v31 = vsel %vm1394_vm1, %v1268_v48, %v370_v45  ;;  %vm352_vm6 = vweird.f32 %v1306_v14  ;;  %v384_v12 = vsel %vm1413_vm3, %v1272_v54, %v380_v17  ;;  %v358_v37 = vmul.f32 0.5, %v357_v6 }
  0xa5   :  { %v228_v10 = vpop.xlane.xlu0 %227  ;;  %495 = vadd.xlane.f32.xlu2 %v465_v20  ;;  %v339_v21 = vsub.f32 1.5, %v338_v4  ;;  %vm341_vm7 = vweird.f32 %v1266_v47  ;;  %vm342_vm8 = vweird.f32 %v1314_v27  ;;  %v318_v41 = vmul.f32 0.5, %v317_v11  ;;  %vm1450_vm9 = vmor %vm351_vm5, %vm352_vm6 }
  0xa6   :  { %v1369_v16 = vmax.f32 %v228_v10, 1e-24  ;;  %v1373_v9 = vpop.eup %964  ;;  %v1447_v4 = vmul.f32 %v374_v31, %v1164_v22  ;;  %v1457_v49 = vmul.f32 %v384_v12, %v1150_v15  ;;  %vm1460_vm10 = vmor %vm341_vm7, %vm342_vm8  ;;  %v390_v6 = vmul.f32 %v1294_v3, %v389_v18 }
  0xa7   :  { %v306_v42 = vmul.f32 %v1373_v9, %v1309_v24  ;;  %v1420_v2 = vpop.eup %966  ;;  %v340_v17 = vmul.f32 %v1314_v27, %v339_v21  ;;  %v1482_v31 = vpop.f32.mrf.mxu0  ;;  %vm362_vm13 = vweird.f32 %v1356_v61  ;;  %vm321_vm14 = vweird.f32 %v1296_v7 }
  0xa8   :  { %970 = vrsqrt.f32 %v1369_v16  ;;  %v1426_v30 = vpop.eup %968  ;;  %v326_v48 = vmul.f32 %v1420_v2, %v1341_v50  ;;  %vm322_vm15 = vweird.f32 %v1366_v13  ;;  %vm311_vm0 = vweird.f32 %v1309_v24  ;;  %vm1508_vm2 = vmor %vm361_vm11, %vm362_vm13 }
  0xa9   :  { %v307_v35 = vmul.f32 %v1373_v9, %v306_v42  ;;  %972 = vrsqrt.f32 %v1398_v28  ;;  %v286_v39 = vmul.f32 %v1426_v30, %v1348_v56  ;;  %v350_v42 = vmul.f32 %v1306_v14, %v349_v1  ;;  %vm1517_vm3 = vmor %vm321_vm14, %vm322_vm15 }
  0xaa   :  { %v1402_v60 = vpop.f32.mrf.mxu2  ;;  %v1418_v10 = vpop.f32.mrf.mxu3  ;;  %v359_v1 = vsub.f32 1.5, %v358_v37  ;;  %v327_v11 = vmul.f32 %v1420_v2, %v326_v48  ;;  %vm312_vm1 = vweird.f32 %v1373_v9  ;;  %vm291_vm5 = vweird.f32 %v1348_v56 }
  0xab   :  { %v466_v20 = vmul.f32 %v1405_v0, %v1418_v10  ;;  %v308_v54 = vmul.f32 0.5, %v307_v35  ;;  %v319_v35 = vsub.f32 1.5, %v318_v41  ;;  %v287_v18 = vmul.f32 %v1426_v30, %v286_v39  ;;  %vm1527_vm4 = vmor %vm311_vm0, %vm312_vm1 }
  0xac   :  { %v460_v12 = vmul.f32 %v1447_v4, %v1402_v60  ;;  %v354_v37 = vsel %vm1450_vm9, %v1306_v14, %v350_v42  ;;  %v344_v41 = vsel %vm1460_vm10, %v1314_v27, %v340_v17  ;;  %v394_v14 = vsel %vm1475_vm12, %v1294_v3, %v390_v6 }
  0xad   :  { %497 = vadd.xlane.f32.xlu1 %v466_v20  ;;  %v309_v29 = vsub.f32 1.5, %v308_v54  ;;  %v328_v39 = vmul.f32 0.5, %v327_v11  ;;  %v1504_v45 = vmul.f32 %v354_v37, %v1168_v25  ;;  %v288_v27 = vmul.f32 0.5, %v287_v18 }
  0xae   :  { %v1432_v57 = vpop.eup %970  ;;  %v1513_v54 = vmul.f32 %v344_v41, %v1185_v33  ;;  %v360_v3 = vmul.f32 %v1356_v61, %v359_v1  ;;  %v1522_v19 = vmul.f32 %v394_v14, %v1127_v5  ;;  %vm292_vm6 = vweird.f32 %v1426_v30 }
  0xaf   :  { %v276_v47 = vmul.f32 %v1432_v57, %v1369_v16  ;;  %v1479_v21 = vpop.eup %972  ;;  %v310_v59 = vmul.f32 %v1373_v9, %v309_v29  ;;  %v329_v1 = vsub.f32 1.5, %v328_v39  ;;  %v458_v5 = vmul.f32 %v1504_v45, %v1289_v62  ;;  %v1552_v29 = vpop.f32.mrf.mxu0  ;;  %vm1565_vm11 = vmor %vm291_vm5, %vm292_vm6 }
  0xb0   :  { %v296_v42 = vmul.f32 %v1479_v21, %v1398_v28  ;;  %v289_v15 = vsub.f32 1.5, %v288_v27  ;;  %v364_v24 = vsel %vm1508_vm2, %v1356_v61, %v360_v3  ;;  %vm331_vm7 = vweird.f32 %v1341_v50 }
  0xb1   :  { %v277_v48 = vmul.f32 %v1432_v57, %v276_v47  ;;  %v320_v47 = vmul.f32 %v1366_v13, %v319_v35  ;;  %v457_v35 = vmul.f32 %v1513_v54, %v1253_v32  ;;  %v314_v37 = vsel %vm1527_vm4, %v1373_v9, %v310_v59 }
  0xb2   :  { %v1464_v22 = vpop.f32.mrf.mxu2  ;;  %v297_v11 = vmul.f32 %v1479_v21, %v296_v42  ;;  %vm332_vm8 = vweird.f32 %v1420_v2  ;;  %vm281_vm9 = vweird.f32 %v1369_v16  ;;  %vm282_vm10 = vweird.f32 %v1432_v57 }
  0xb3   :  { %v461_v20 = vmul.f32 %v1457_v49, %v1464_v22  ;;  %v278_v25 = vmul.f32 0.5, %v277_v48  ;;  %v324_v18 = vsel %vm1517_vm3, %v1366_v13, %v320_v47  ;;  %v1558_v61 = vmul.f32 %v364_v24, %v1166_v23  ;;  %vm333_vm12 = vmor %vm331_vm7, %vm332_vm8 }
  0xb4   :  { %v1561_v13 = vmul.f32 %v324_v18, %v1189_v36  ;;  %v298_v48 = vmul.f32 0.5, %v297_v11  ;;  %v330_v9 = vmul.f32 %v1420_v2, %v329_v1  ;;  %v1571_v41 = vmul.f32 %v314_v37, %v1203_v43  ;;  %vm1575_vm13 = vmor %vm281_vm9, %vm282_vm10  ;;  %v1622_v11 = vld [vmem:[%s1784_s4] ss:$0 sm:$0xff] }
  0xb5   :  { %487 = vadd.xlane.f32.xlu0 %v461_v20  ;;  %485 = vadd.xlane.f32.xlu1 %v460_v12  ;;  %v279_v12 = vsub.f32 1.5, %v278_v25  ;;  %v290_v16 = vmul.f32 %v1426_v30, %v289_v15  ;;  %v459_v56 = vmul.f32 %v1558_v61, %v1343_v52  ;;  %vm301_vm14 = vweird.f32 %v1398_v28 }
  0xb6   :  { %v455_v14 = vmul.f32 %v1561_v13, %v1552_v29  ;;  %v299_v39 = vsub.f32 1.5, %v298_v48  ;;  %v334_v42 = vsel %vm333_vm12, %v1420_v2, %v330_v9  ;;  %v454_v43 = vmul.f32 %v1571_v41, %v1482_v31 }
  0xb7   :  { %v280_v23 = vmul.f32 %v1432_v57, %v279_v12  ;;  %v294_v7 = vsel %vm1565_vm11, %v1426_v30, %v290_v16  ;;  %vm302_vm15 = vweird.f32 %v1479_v21  ;;  %v1595_v2 = vmul.f32 %v334_v42, %v1187_v34  ;;  %v1600_v47 = vpop.f32.mrf.mxu0 }
  0xb8   :  { %v1598_v3 = vmul.f32 %v294_v7, %v1207_v46  ;;  %v300_v17 = vmul.f32 %v1479_v21, %v299_v39  ;;  %vm303_vm0 = vmor %vm301_vm14, %vm302_vm15 }
  0xb9   :  { %v284_v27 = vsel %vm1575_vm13, %v1432_v57, %v280_v23  ;;  %v456_v57 = vmul.f32 %v1595_v2, %v1600_v47 }
  0xba   :  { %v1531_v33 = vpop.f32.mrf.mxu2  ;;  %v1603_v30 = vmul.f32 %v284_v27, %v1221_v53  ;;  %v452_v28 = vmul.f32 %v1598_v3, %v1333_v38  ;;  %v304_v46 = vsel %vm303_vm0, %v1479_v21, %v300_v17 }
  0xbb   :  { %v462_v20 = vmul.f32 %v1522_v19, %v1531_v33  ;;  %v1614_v53 = vmul.f32 %v304_v46, %v1205_v44 }
  0xbc   :  { %v451_v34 = vmul.f32 %v1603_v30, %v1270_v51 }
  0xbd   :  { %481 = vadd.xlane.f32.xlu0 %v458_v5  ;;  %489 = vadd.xlane.f32.xlu2 %v462_v20  ;;  %v453_v25 = vmul.f32 %v1614_v53, %v1400_v55 }
  0xbe   :  { %479 = vadd.xlane.f32.xlu1 %v457_v35 }
  0xc5   :  { %483 = vadd.xlane.f32.xlu2 %v459_v56  ;;  %475 = vadd.xlane.f32.xlu0 %v455_v14 }
  0xc6   :  { %473 = vadd.xlane.f32.xlu1 %v454_v43 }
  0xcd   :  { %469 = vadd.xlane.f32.xlu0 %v452_v28  ;;  %477 = vadd.xlane.f32.xlu2 %v456_v57 }
  0xce   :  { %467 = vadd.xlane.f32.xlu1 %v451_v34 }
  0xd5   :  { %471 = vadd.xlane.f32.xlu2 %v453_v25 }
 0x110   :  { %v494_v59 = vpop.xlane.xlu0 %493 }
 0x111   :  { %v512_v6 = vmul.f32 2.0, %v494_v59 }
 0x112   :  { %v492_v21 = vpop.xlane.xlu1 %491 }
 0x113   :  { %v528_v1 = vmul.f32 %v512_v6, %v1292_v63  ;;  %v511_v5 = vmul.f32 2.0, %v492_v21 }
 0x115   :  { %v1625_v20 = vsub.f32 %v1298_v8, %v528_v1  ;;  %v527_v15 = vmul.f32 %v511_v5, %v1312_v26  ;;  %v1816_v8 = vld [vmem:[#allocation9_spill] sm:$0xff] }
 0x117   :  { %v564_v44 = vmul.f32 %v1622_v11, %v1625_v20  ;;  %v1631_v63 = vsub.f32 %v1259_v40, %v527_v15 }
 0x118   :  { %v496_v35 = vpop.xlane.xlu2 %495 }
 0x119   :  { %593 = vadd.xlane.f32.xlu1 %v564_v44  ;;  %v513_v24 = vmul.f32 2.0, %v496_v35  ;;  %v563_v12 = vmul.f32 %v1622_v11, %v1631_v63 }
 0x11b   :  { %v529_v18 = vmul.f32 %v513_v24, %v1353_v58  ;;  %591 = vadd.xlane.f32.xlu2 %v563_v12 }
 0x11d   :  { %v1637_v37 = vsub.f32 %v1816_v8, %v529_v18 }
 0x11f   :  { %v565_v50 = vmul.f32 %v1622_v11, %v1637_v37 }
 0x120   :  { %v498_v48 = vpop.xlane.xlu1 %497 }
 0x121   :  { %v514_v26 = vmul.f32 2.0, %v498_v48  ;;  %595 = vadd.xlane.f32.xlu0 %v565_v50 }
 0x123   :  { %v530_v9 = vmul.f32 %v514_v26, %v1405_v0 }
 0x125   :  { %v1643_v40 = vsub.f32 %v1418_v10, %v530_v9 }
 0x127   :  { %v566_v58 = vmul.f32 %v1622_v11, %v1643_v40 }
 0x128   :  { %v488_v16 = vpop.xlane.xlu0 %487  ;;  %v486_v23 = vpop.xlane.xlu1 %485 }
 0x129   :  { %v509_v36 = vmul.f32 2.0, %v488_v16  ;;  %v508_v56 = vmul.f32 2.0, %v486_v23  ;;  %597 = vadd.xlane.f32.xlu2 %v566_v58 }
 0x12b   :  { %v525_v14 = vmul.f32 %v509_v36, %v1457_v49  ;;  %v524_v39 = vmul.f32 %v508_v56, %v1447_v4 }
 0x12d   :  { %v1650_v42 = vsub.f32 %v1464_v22, %v525_v14  ;;  %v1653_v0 = vsub.f32 %v1402_v60, %v524_v39  ;;  %v631_v39 = vlaneseq }
 0x12f   :  { %v561_v10 = vmul.f32 %v1622_v11, %v1650_v42  ;;  %v560_v27 = vmul.f32 %v1622_v11, %v1653_v0 }
 0x130   :  { %v482_v43 = vpop.xlane.xlu0 %481  ;;  %v490_v7 = vpop.xlane.xlu2 %489 }
 0x131   :  { %v480_v17 = vpop.xlane.xlu1 %479  ;;  %v506_v57 = vmul.f32 2.0, %v482_v43  ;;  %v510_v28 = vmul.f32 2.0, %v490_v7  ;;  %587 = vadd.xlane.f32.xlu1 %v561_v10  ;;  %585 = vadd.xlane.f32.xlu2 %v560_v27  ;;  %v632_v27 = vand.u32 127, %v631_v39 }
 0x132   :  { %v505_v49 = vmul.f32 2.0, %v480_v17 }
 0x133   :  { %v522_v4 = vmul.f32 %v506_v57, %v1504_v45  ;;  %v526_v22 = vmul.f32 %v510_v28, %v1522_v19  ;;  %vm633_vm1 = vcmp.eq.s32.totalorder %v632_v27, 32 }
 0x134   :  { %v521_v60 = vmul.f32 %v505_v49, %v1513_v54 }
 0x135   :  { %v1663_v34 = vsub.f32 %v1289_v62, %v522_v4  ;;  %v1666_v46 = vsub.f32 %v1531_v33, %v526_v22 }
 0x136   :  { %v1669_v25 = vsub.f32 %v1253_v32, %v521_v60 }
 0x137   :  { %v558_v59 = vmul.f32 %v1622_v11, %v1663_v34  ;;  %v562_v6 = vmul.f32 %v1622_v11, %v1666_v46 }
 0x138   :  { %v484_v45 = vpop.xlane.xlu2 %483  ;;  %v476_v1 = vpop.xlane.xlu0 %475  ;;  %v557_v54 = vmul.f32 %v1622_v11, %v1669_v25 }
 0x139   :  { %v507_v19 = vmul.f32 2.0, %v484_v45  ;;  %v474_v62 = vpop.xlane.xlu1 %473  ;;  %v503_v21 = vmul.f32 2.0, %v476_v1  ;;  %581 = vadd.xlane.f32.xlu1 %v558_v59  ;;  %589 = vadd.xlane.f32.xlu0 %v562_v6 }
 0x13a   :  { %v502_v33 = vmul.f32 2.0, %v474_v62  ;;  %579 = vadd.xlane.f32.xlu2 %v557_v54 }
 0x13b   :  { %v523_v32 = vmul.f32 %v507_v19, %v1558_v61  ;;  %v519_v5 = vmul.f32 %v503_v21, %v1561_v13 }
 0x13c   :  { %v518_v44 = vmul.f32 %v502_v33, %v1571_v41 }
 0x13d   :  { %v1681_v15 = vsub.f32 %v1343_v52, %v523_v32  ;;  %v1684_v35 = vsub.f32 %v1552_v29, %v519_v5 }
 0x13e   :  { %v1687_v24 = vsub.f32 %v1482_v31, %v518_v44 }
 0x13f   :  { %v559_v18 = vmul.f32 %v1622_v11, %v1681_v15  ;;  %v555_v12 = vmul.f32 %v1622_v11, %v1684_v35 }
 0x140   :  { %v470_v61 = vpop.xlane.xlu0 %469  ;;  %v478_v8 = vpop.xlane.xlu2 %477  ;;  %v554_v13 = vmul.f32 %v1622_v11, %v1687_v24 }
 0x141   :  { %v468_v41 = vpop.xlane.xlu1 %467  ;;  %v500_v52 = vmul.f32 2.0, %v470_v61  ;;  %v504_v48 = vmul.f32 2.0, %v478_v8  ;;  %583 = vadd.xlane.f32.xlu0 %v559_v18  ;;  %575 = vadd.xlane.f32.xlu1 %v555_v12 }
 0x142   :  { %v499_v29 = vmul.f32 2.0, %v468_v41  ;;  %573 = vadd.xlane.f32.xlu2 %v554_v13 }
 0x143   :  { %v516_v31 = vmul.f32 %v500_v52, %v1598_v3  ;;  %v520_v50 = vmul.f32 %v504_v48, %v1595_v2 }
 0x144   :  { %v515_v26 = vmul.f32 %v499_v29, %v1603_v30 }
 0x145   :  { %v1699_v9 = vsub.f32 %v1333_v38, %v516_v31  ;;  %v1702_v16 = vsub.f32 %v1600_v47, %v520_v50 }
 0x146   :  { %v1705_v58 = vsub.f32 %v1270_v51, %v515_v26 }
 0x147   :  { %v552_v23 = vmul.f32 %v1622_v11, %v1699_v9  ;;  %v556_v36 = vmul.f32 %v1622_v11, %v1702_v16 }
 0x148   :  { %v472_v3 = vpop.xlane.xlu2 %471  ;;  %v551_v2 = vmul.f32 %v1622_v11, %v1705_v58 }
 0x149   :  { %v501_v30 = vmul.f32 2.0, %v472_v3  ;;  %569 = vadd.xlane.f32.xlu1 %v552_v23  ;;  %577 = vadd.xlane.f32.xlu0 %v556_v36 }
 0x14a   :  { %567 = vadd.xlane.f32.xlu2 %v551_v2 }
 0x14b   :  { %v517_v38 = vmul.f32 %v501_v30, %v1614_v53  ;;  %v1077_v53 = vmov 0.0  }
 0x14c   :  { %v1719_v49 = vsel %vm633_vm1, 1.0, %v1077_v53 }
 0x14d   :  { %v1715_v47 = vsub.f32 %v1400_v55, %v517_v38  ;;  %v651_v22 = vadd.f32 %v1719_v49, %v1643_v40  ;;  %v650_v6 = vadd.f32 %v1719_v49, %v1637_v37  ;;  %v649_v54 = vadd.f32 %v1719_v49, %v1625_v20 }
 0x14e   :  { %v648_v40 = vadd.f32 %v1719_v49, %v1631_v63  ;;  %v647_v63 = vadd.f32 %v1719_v49, %v1666_v46  ;;  %v646_v29 = vadd.f32 %v1719_v49, %v1650_v42  ;;  %v645_v23 = vadd.f32 %v1719_v49, %v1653_v0 }
 0x14f   :  { %v553_v51 = vmul.f32 %v1622_v11, %v1715_v47  ;;  %v644_v42 = vadd.f32 %v1719_v49, %v1681_v15  ;;  %v643_v0 = vadd.f32 %v1719_v49, %v1663_v34  ;;  %v641_v34 = vadd.f32 %v1719_v49, %v1702_v16 }
 0x150   :  { %v638_v16 = vadd.f32 %v1719_v49, %v1715_v47  ;;  %v636_v47 = vadd.f32 %v1719_v49, %v1705_v58 }
 0x151   :  { %571 = vadd.xlane.f32.xlu0 %v553_v51 }
 0x18c   :  { %v594_v10 = vpop.xlane.xlu1 %593 }
 0x18d   :  { %v625_v17 = vmul.f32 1.442695, %v594_v10 }
 0x18e   :  { %v592_v56 = vpop.xlane.xlu2 %591 }
 0x18f   :  { %v623_v28 = vmul.f32 1.442695, %v592_v56 }
 0x194   :  { %v596_v14 = vpop.xlane.xlu0 %595 }
 0x195   :  { %v627_v43 = vmul.f32 1.442695, %v596_v14 }
 0x197   :  { %974 = vpow2.f32 %v627_v43  ;;  %v642_v43 = vadd.f32 %v1719_v49, %v1669_v25  ;;  %v640_v25 = vadd.f32 %v1719_v49, %v1684_v35  ;;  %v637_v35 = vadd.f32 %v1719_v49, %v1699_v9 }
 0x19c   :  { %v598_v7 = vpop.xlane.xlu2 %597 }
 0x19d   :  { %v629_v57 = vmul.f32 1.442695, %v598_v7  ;;  %v975_v11 = vpop.eup %974 }
 0x19e   :  { %v666_v1 = vmul.f32 %v975_v11, %v650_v6 }
 0x19f   :  { %976 = vpow2.f32 %v629_v57 }
 0x1a0   :  { %978 = vpow2.f32 %v625_v17 }
 0x1a1   :  { %980 = vpow2.f32 %v623_v28 }
 0x1a4   :  { %v588_v55 = vpop.xlane.xlu1 %587  ;;  %v586_v4 = vpop.xlane.xlu2 %585 }
 0x1a5   :  { %v977_v60 = vpop.eup %976  ;;  %v619_v62 = vmul.f32 1.442695, %v588_v55  ;;  %v617_v44 = vmul.f32 1.442695, %v586_v4 }
 0x1a6   :  { %v667_v59 = vmul.f32 %v977_v60, %v651_v22  ;;  %v979_v45 = vpop.eup %978  ;;  %v639_v60 = vadd.f32 %v1719_v49, %v1687_v24  ;;  %v907_v24 = vld [vmem:[%s1783_s3 + $0x8] sm:$0xff]  }
 0x1a7   :  { %v981_v19 = vpop.eup %980  ;;  %v665_v21 = vmul.f32 %v979_v45, %v649_v54  ;;  %982 = vpow2.f32 %v619_v62  ;;  %v893_v54 = vld [vmem:[%s1783_s3] sm:$0xff]   ;;  %s1079_s3 = smov [#allocation6]  }
 0x1a8   :  { %680 = vmatpush.msra.mxu1 %v667_v59  ;;  %916 = vmatpush.msrb.mxu3 %v667_v59  ;;  %v664_v37 = vmul.f32 %v981_v19, %v648_v40  ;;  %v899_v40 = vunpack.c.h.bf16 %v907_v24  ;;  %s828_s27 = sshll.u32 %s1079_s3, 4  ;;  %s829_s27 = int_to_ptr.vmem [resolvable:$true] %s828_s27 }
 0x1aa   :  { %681 = vmatpush.msra.mxu1 %v666_v1  ;;  %917 = vmatpush.msrb.mxu3 %v666_v1 }
 0x1ac   :  { %v582_v33 = vpop.xlane.xlu1 %581  ;;  %v590_v32 = vpop.xlane.xlu0 %589  ;;  %682 = vmatpush.msra.mxu1 %v665_v21  ;;  %918 = vmatpush.msrb.mxu3 %v665_v21  ;;  %v894_v21 = vunpack.c.l.bf16 %v893_v54 }
 0x1ad   :  { %v621_v5 = vmul.f32 1.442695, %v590_v32  ;;  %v580_v18 = vpop.xlane.xlu2 %579  ;;  %v613_v20 = vmul.f32 1.442695, %v582_v33  ;;  %v983_v61 = vpop.eup %982  ;;  %v895_v33 = vunpack.c.h.bf16 %v893_v54  ;;  %v898_v32 = vunpack.c.l.bf16 %v907_v24 }
 0x1ae   :  { %683 = vmatpush.msra.mxu1 %v664_v37  ;;  %919 = vmatpush.msrb.mxu3 %v664_v37  ;;  %v611_v52 = vmul.f32 1.442695, %v580_v18  ;;  %v662_v26 = vmul.f32 %v983_v61, %v646_v29 }
 0x1af   :  { %984 = vpow2.f32 %v621_v5  ;;  %v1078_v5 = vmov 32  }
 0x1b0   :  { %986 = vpow2.f32 %v617_v44  ;;  %938 = vset.pattern.permute.xlu0 %v1078_v5  ;;  %939 = vset.pattern.permute.xlu1 %v1078_v5 }
 0x1b1   :  { %988 = vpow2.f32 %v613_v20  ;;  %940 = vset.pattern.permute.xlu2 %v1078_v5 }
 0x1b4   :  { %v584_v12 = vpop.xlane.xlu0 %583  ;;  %v576_v8 = vpop.xlane.xlu1 %575 }
 0x1b5   :  { %v615_v13 = vmul.f32 1.442695, %v584_v12  ;;  %v985_v41 = vpop.eup %984  ;;  %v574_v50 = vpop.xlane.xlu2 %573  ;;  %v607_v36 = vmul.f32 1.442695, %v576_v8 }
 0x1b6   :  { %v663_v48 = vmul.f32 %v985_v41, %v647_v63  ;;  %v987_v31 = vpop.eup %986  ;;  %v605_v51 = vmul.f32 1.442695, %v574_v50 }
 0x1b7   :  { %990 = vpow2.f32 %v615_v13  ;;  %v661_v46 = vmul.f32 %v987_v31, %v645_v23  ;;  %v989_v2 = vpop.eup %988 }
 0x1b8   :  { %684 = vmatpush.msra.mxu1 %v663_v48  ;;  %920 = vmatpush.msrb.mxu3 %v663_v48  ;;  %992 = vpow2.f32 %v611_v52  ;;  %v659_v10 = vmul.f32 %v989_v2, %v643_v0 }
 0x1b9   :  { %994 = vpow2.f32 %v607_v36 }
 0x1ba   :  { %685 = vmatpush.msra.mxu1 %v662_v26  ;;  %921 = vmatpush.msrb.mxu3 %v662_v26 }
 0x1bc   :  { %v578_v3 = vpop.xlane.xlu0 %577  ;;  %686 = vmatpush.msra.mxu1 %v661_v46  ;;  %922 = vmatpush.msrb.mxu3 %v661_v46  ;;  %v570_v56 = vpop.xlane.xlu1 %569 }
 0x1bd   :  { %v609_v30 = vmul.f32 1.442695, %v578_v3  ;;  %v991_v38 = vpop.eup %990  ;;  %v601_v7 = vmul.f32 1.442695, %v570_v56  ;;  %v568_v27 = vpop.xlane.xlu2 %567 }
 0x1be   :  { %v660_v14 = vmul.f32 %v991_v38, %v644_v42  ;;  %v993_v39 = vpop.eup %992  ;;  %v599_v28 = vmul.f32 1.442695, %v568_v27 }
 0x1bf   :  { %996 = vpow2.f32 %v609_v30  ;;  %v658_v15 = vmul.f32 %v993_v39, %v642_v43  ;;  %v995_v57 = vpop.eup %994 }
 0x1c0   :  { %687 = vmatpush.msra.mxu1 %v660_v14  ;;  %923 = vmatpush.msrb.mxu3 %v660_v14  ;;  %998 = vpow2.f32 %v605_v51  ;;  %v656_v22 = vmul.f32 %v995_v57, %v640_v25 }
 0x1c1   :  { %1000 = vpow2.f32 %v601_v7 }
 0x1c2   :  { %688 = vmatpush.msra.mxu1 %v659_v10  ;;  %924 = vmatpush.msrb.mxu3 %v659_v10 }
 0x1c4   :  { %v572_v17 = vpop.xlane.xlu0 %571  ;;  %689 = vmatpush.msra.mxu1 %v658_v15  ;;  %925 = vmatpush.msrb.mxu3 %v658_v15 }
 0x1c5   :  { %v603_v55 = vmul.f32 1.442695, %v572_v17  ;;  %v997_v53 = vpop.eup %996 }
 0x1c6   :  { %v657_v11 = vmul.f32 %v997_v53, %v641_v34  ;;  %v999_v4 = vpop.eup %998 }
 0x1c7   :  { %1002 = vpow2.f32 %v603_v55  ;;  %v655_v59 = vmul.f32 %v999_v4, %v639_v60  ;;  %v1001_v6 = vpop.eup %1000 }
 0x1c8   :  { %1004 = vpow2.f32 %v599_v28  ;;  %690 = vmatpush.msra.mxu1 %v657_v11  ;;  %926 = vmatpush.msrb.mxu3 %v657_v11  ;;  %v653_v62 = vmul.f32 %v1001_v6, %v637_v35 }
 0x1ca   :  { %691 = vmatpush.msra.mxu1 %v656_v22  ;;  %927 = vmatpush.msrb.mxu3 %v656_v22 }
 0x1cc   :  { %692 = vmatpush.msra.mxu1 %v655_v59  ;;  %928 = vmatpush.msrb.mxu3 %v655_v59 }
 0x1cd   :  { %v1003_v45 = vpop.eup %1002 }
 0x1ce   :  { %v654_v1 = vmul.f32 %v1003_v45, %v638_v16  ;;  %v1005_v19 = vpop.eup %1004 }
 0x1cf   :  { %v652_v9 = vmul.f32 %v1005_v19, %v636_v47 }
 0x1d0   :  { %693 = vmatpush.msra.mxu1 %v654_v1  ;;  %929 = vmatpush.msrb.mxu3 %v654_v1 }
 0x1d2   :  { %694 = vmatpush.msra.mxu1 %v653_v62  ;;  %930 = vmatpush.msrb.mxu3 %v653_v62 }
 0x1d4   :  { %695 = vmatpush.msra.mxu1 %v652_v9  ;;  %931 = vmatpush.msrb.mxu3 %v652_v9 }
 0x1d5   :  { %696 = vmatmul.f32.vlgmr.msra.gmra.mxu1 %v894_v21  ;;  %705 = vmatmul.f32.vlgmr.msrb.gmra.mxu3 %v899_v40 }
 0x1dd   :  { %699 = vmatmul.f32.gmra.mxu1 %v895_v33 }
 0x1e5   :  { %702 = vmatmul.f32.gmra.mxu1 %v898_v32 }
 0x252   :  { %v1759_v37 = vpop.f32.mrf.mxu1 }
 0x253   :  { %vm724_vm2 = vcmp.eq.f32.partialorder %v1759_v37, 0.0  ;;  %v788_v35 = vmul.f32 2.0, %v1759_v37 }
 0x254   :  { %v728_v58 = vsel %vm724_vm2, 1.0, %v1759_v37 }
 0x255   :  { %1006 = vrcp.f32 %v728_v58  ;;  %v743_v13 = vand.u32 2147483648, %v728_v58  ;;  %v741_v41 = vand.u32 2147483647, %v728_v58  ;;  %vm737_vm6 = vweird.f32 %v728_v58 }
 0x257   :  { %v744_v31 = vor.u32 1.1754944e-38, %v743_v13  ;;  %vm742_vm9 = vcmp.eq.f32.partialorder %v741_v41, 8.507059e+37 }
 0x258   :  { %v1763_v49 = vpop.f32.mrf.mxu3 }
 0x259   :  { %vm727_vm4 = vcmp.eq.f32.partialorder %v1763_v49, 0.0  ;;  %v791_v1 = vmul.f32 2.0, %v1763_v49 }
 0x25a   :  { %v1765_v44 = vpop.f32.mrf.mxu1  ;;  %v731_v8 = vsel %vm727_vm4, 1.0, %v1763_v49 }
 0x25b   :  { %v1007_v18 = vpop.eup %1006  ;;  %vm725_vm3 = vcmp.eq.f32.partialorder %v1765_v44, 0.0  ;;  %vm779_vm2 = vweird.f32 %v731_v8  ;;  %v785_v11 = vand.u32 2147483648, %v731_v8  ;;  %v783_v4 = vand.u32 2147483647, %v731_v8 }
 0x25c   :  { %v733_v20 = vmul.f32 %v1007_v18, %v728_v58  ;;  %v729_v12 = vsel %vm725_vm3, 1.0, %v1765_v44  ;;  %vm738_vm5 = vweird.f32 %v1007_v18  ;;  %v789_v21 = vmul.f32 2.0, %v1765_v44 }
 0x25d   :  { %1008 = vrcp.f32 %v729_v12  ;;  %vm739_vm8 = vmor %vm737_vm6, %vm738_vm5  ;;  %v757_v2 = vand.u32 2147483648, %v729_v12  ;;  %v755_v42 = vand.u32 2147483647, %v729_v12  ;;  %vm751_vm11 = vweird.f32 %v729_v12 }
 0x25e   :  { %v734_v61 = vsub.f32 1.0, %v733_v20  ;;  %1010 = vrcp.f32 %v731_v8  ;;  %v786_v22 = vor.u32 1.1754944e-38, %v785_v11  ;;  %vm784_vm5 = vcmp.eq.f32.partialorder %v783_v4, 8.507059e+37 }
 0x25f   :  { %v758_v14 = vor.u32 1.1754944e-38, %v757_v2  ;;  %vm756_vm13 = vcmp.eq.f32.partialorder %v755_v42, 8.507059e+37 }
 0x260   :  { %v735_v63 = vmul.f32 %v1007_v18, %v734_v61 }
 0x262   :  { %v703_v52 = vpop.f32.mrf.mxu1  ;;  %v736_v48 = vadd.f32 %v1007_v18, %v735_v63 }
 0x263   :  { %v1009_v29 = vpop.eup %1008  ;;  %vm726_vm7 = vcmp.eq.f32.partialorder %v703_v52, 0.0  ;;  %v790_v6 = vmul.f32 2.0, %v703_v52 }
 0x264   :  { %v747_v50 = vmul.f32 %v1009_v29, %v729_v12  ;;  %v730_v26 = vsel %vm726_vm7, 1.0, %v703_v52  ;;  %v740_v23 = vsel %vm739_vm8, %v1007_v18, %v736_v48  ;;  %v1011_v3 = vpop.eup %1010  ;;  %vm752_vm10 = vweird.f32 %v1009_v29 }
 0x265   :  { %1012 = vrcp.f32 %v730_v26  ;;  %v745_v36 = vsel %vm742_vm9, %v744_v31, %v740_v23  ;;  %v775_v38 = vmul.f32 %v1011_v3, %v731_v8  ;;  %vm753_vm12 = vmor %vm751_vm11, %vm752_vm10  ;;  %v771_v27 = vand.u32 2147483648, %v730_v26 }
 0x266   :  { %v748_v46 = vsub.f32 1.0, %v747_v50  ;;  %794 = vperm.xlu0 %938, %v745_v36   ;;  %vm765_vm14 = vweird.f32 %v730_v26  ;;  %v769_v17 = vand.u32 2147483647, %v730_v26  ;;  %vm780_vm3 = vweird.f32 %v1011_v3 }
 0x267   :  { %v776_v7 = vsub.f32 1.0, %v775_v38  ;;  %v772_v55 = vor.u32 1.1754944e-38, %v771_v27  ;;  %vm781_vm4 = vmor %vm779_vm2, %vm780_vm3 }
 0x268   :  { %v749_v30 = vmul.f32 %v1009_v29, %v748_v46  ;;  %vm770_vm1 = vcmp.eq.f32.partialorder %v769_v17, 8.507059e+37 }
 0x269   :  { %v777_v28 = vmul.f32 %v1011_v3, %v776_v7 }
 0x26a   :  { %v750_v51 = vadd.f32 %v1009_v29, %v749_v30 }
 0x26b   :  { %v1013_v56 = vpop.eup %1012  ;;  %v778_v25 = vadd.f32 %v1011_v3, %v777_v28 }
 0x26c   :  { %v761_v0 = vmul.f32 %v1013_v56, %v730_v26  ;;  %v754_v39 = vsel %vm753_vm12, %v1009_v29, %v750_v51  ;;  %vm766_vm15 = vweird.f32 %v1013_v56 }
 0x26d   :  { %v759_v10 = vsel %vm756_vm13, %v758_v14, %v754_v39  ;;  %vm767_vm0 = vmor %vm765_vm14, %vm766_vm15  ;;  %v782_v60 = vsel %vm781_vm4, %v1011_v3, %v778_v25 }
 0x26e   :  { %v762_v43 = vsub.f32 1.0, %v761_v0  ;;  %799 = vperm.xlu1 %939, %v759_v10   ;;  %v787_v59 = vsel %vm784_vm5, %v786_v22, %v782_v60 }
 0x270   :  { %v763_v15 = vmul.f32 %v1013_v56, %v762_v43 }
 0x272   :  { %v764_v57 = vadd.f32 %v1013_v56, %v763_v15 }
 0x274   :  { %v768_v34 = vsel %vm767_vm0, %v1013_v56, %v764_v57 }
 0x275   :  { %v773_v53 = vsel %vm770_vm1, %v772_v55, %v768_v34 }
 0x276   :  { %804 = vperm.xlu2 %940, %v773_v53  }
 0x27e   :  { %809 = vperm.xlu2 %940, %v787_v59  }
 0x2d0   :  { %v805_v16 = vpop.permute.xlu2 %804 }
 0x2d1   :  { %v814_v45 = vmul.f32 %v805_v16, %v790_v6 }
 0x2d3   :  { %1014 = vtanh.f32 %v814_v45 }
 0x2d8   :  { %v795_v54 = vpop.permute.xlu0 %794  ;;  %v810_v24 = vpop.permute.xlu2 %809 }
 0x2d9   :  { %v1015_v19 = vpop.eup %1014  ;;  %v812_v62 = vmul.f32 %v795_v54, %v788_v35  ;;  %v815_v47 = vmul.f32 %v810_v24, %v791_v1 }
 0x2da   :  { %822 = vst [vmem:[#allocation6 + $0x10] sm:$0xff] %v1015_v19 }
 0x2db   :  { %1016 = vtanh.f32 %v812_v62 }
 0x2dc   :  { %1018 = vtanh.f32 %v815_v47 }
 0x2e0   :  { %v800_v40 = vpop.permute.xlu1 %799 }
 0x2e1   :  { %v1017_v9 = vpop.eup %1016  ;;  %v813_v33 = vmul.f32 %v800_v40, %v789_v21 }
 0x2e2   :  { %v1019_v32 = vpop.eup %1018  ;;  %820 = vst [vmem:[#allocation6] sm:$0xff] %v1017_v9 }
 0x2e3   :  { %823 = vst [vmem:[#allocation6 + $0x18] sm:$0xff] %v1019_v32  ;;  %1020 = vtanh.f32 %v813_v33 }
 0x2e9   :  { %v1021_v5 = vpop.eup %1020 }
 0x2ea   :  { %821 = vst [vmem:[#allocation6 + $0x8] sm:$0xff] %v1021_v5 }
 0x2eb   :  { %836 = dma.vmem_to_hbm [thread:$0]  %s829_s27, 512, %s831_s30, [#allocation5], %s1075_s23, %s1075_s23, %s1076_s24  }
 0x2ec   :  { %1072 = dma.done.wait [#allocation5], 512  }
 0x2ed   :  { %1073 = vsyncadd [#allocation5], 4294966784 }
 0x2ee   :  { %841 = vsyncpa [#allocation4], 1 }
 0x2ef   :  { %842 = vsyncpa [#allocation5], 1 }

</bundles_post_ra>
